<compile_context>
chip_gen: v5e
topology: v5e:2x2
jax: 0.10.0
libtpu: 0.0.40
codegen_flags: <defaults>
</compile_context>

<pallas_src>
import functools

import jax
import jax.numpy as jnp
from jax.experimental import pallas as pl
from jax.experimental.pallas import tpu as pltpu


def _round_up(a, b):
    return (a + b - 1) // b * b


def _device_settings():
    """(row-tile target, vmem_limit_bytes) tuned per TPU generation."""
    kind = ""
    try:
        kind = jax.devices()[0].device_kind.lower()
    except Exception:
        pass
    if "v6" in kind:                              # v6e: 128 MiB VMEM, 256-wide MXU
        return 256, 96 * 1024 * 1024
    if "v5 lite" in kind or "v5e" in kind or "v5lite" in kind:
        return 128, 96 * 1024 * 1024              # v5e: most bandwidth-bound
    return 128, 48 * 1024 * 1024                  # v7x / unknown: 64 MiB physical VMEM


# ----------------------------- Pallas kernel --------------------------------
def _sage_layer_kernel(a_ref, invdeg_ref, xall_ref, wcat_ref, b_ref, o_ref,
                       *, tm, apply_relu):
    i = pl.program_id(0)

    # int8 counts -> bf16 on the VPU (hidden under the A-tile DMA), then mean
    # aggregation on the bf16 MXU with f32 accumulation; the per-row 1/deg
    # scale is a cheap VPU multiply.
    a = a_ref[...].astype(jnp.bfloat16)                               # (tm, Np)
    agg = jnp.dot(a, xall_ref[...], preferred_element_type=jnp.float32)
    agg = agg * invdeg_ref[...]                                       # (tm, Fp)

    # Self rows straight out of the resident feature slab (no second X copy).
    row0 = pl.multiple_of(i * tm, tm)
    x_self = xall_ref[pl.ds(row0, tm), :]                             # (tm, Fp)

    # Fused lin_l / lin_r: one MXU matmul against the packed [W_l ; W_r].
    cat = jnp.concatenate([agg.astype(xall_ref.dtype), x_self], axis=-1)
    out = jnp.dot(cat, wcat_ref[...],
                  preferred_element_type=jnp.float32) + b_ref[...]
    if apply_relu:
        out = jnp.maximum(out, 0.0)
    o_ref[...] = out.astype(o_ref.dtype)


def _resident_spec(shape, single_buffer):
    """Grid-invariant input (constant index_map); optionally single-buffered."""
    index_map = lambda i: (0, 0)
    if single_buffer:
        return pl.BlockSpec(shape, index_map, pipeline_mode=pl.Buffered(1))
    return pl.BlockSpec(shape, index_map)


def _sage_layer(a, inv_deg, x, wcat, b, *, tm, apply_relu, out_dtype,
                vmem_limit_bytes, single_buffer_residents):
    n_p = a.shape[0]
    f_p = x.shape[1]
    h_p = wcat.shape[1]

    flops = 2 * n_p * n_p * f_p + 2 * n_p * (2 * f_p) * h_p
    bytes_accessed = (a.size * a.dtype.itemsize
                      + x.size * x.dtype.itemsize
                      + inv_deg.size * 4
                      + wcat.size * wcat.dtype.itemsize
                      + b.size * 4
                      + n_p * h_p * jnp.dtype(out_dtype).itemsize)

    return pl.pallas_call(
        functools.partial(_sage_layer_kernel, tm=tm, apply_relu=apply_relu),
        out_shape=jax.ShapeDtypeStruct((n_p, h_p), out_dtype),
        grid=(n_p // tm,),
        in_specs=[
            pl.BlockSpec((tm, n_p), lambda i: (i, 0)),   # A row tile (default 2-buf)
            pl.BlockSpec((tm, 1), lambda i: (i, 0)),     # 1/deg row tile
            _resident_spec((n_p, f_p), single_buffer_residents),  # all node features
            _resident_spec(wcat.shape, single_buffer_residents),  # fused [W_l; W_r]
            _resident_spec(b.shape, single_buffer_residents),     # bias
        ],
        out_specs=pl.BlockSpec((tm, h_p), lambda i: (i, 0)),
        compiler_params=pltpu.CompilerParams(
            dimension_semantics=("parallel",),
            vmem_limit_bytes=vmem_limit_bytes),
        cost_estimate=pl.CostEstimate(flops=flops, transcendentals=0,
                                      bytes_accessed=bytes_accessed),
    )(a, inv_deg, x, wcat, b)


# ----------------------------- wrapper / glue --------------------------------
def _pack_wcat(wl, wr, f_pad, h_pad):
    """Pack [W_l ; W_r] into a lane-padded (2*f_pad, h_pad) bf16 weight."""
    f_in, f_out = wl.shape
    wc = jnp.zeros((2 * f_pad, h_pad), jnp.float32)
    wc = wc.at[:f_in, :f_out].set(wl)
    wc = wc.at[f_pad:f_pad + f_in, :f_out].set(wr)
    return wc.astype(jnp.bfloat16)


def precompute_graph(edge_index, num_nodes, *, tm=None):
    """Build the padded int8 in-edge-count matrix and 1/in-degree ONCE.

    Hoisted out of the per-forward path so the O(N^2) scatter-add / cast is
    not redone for every forward pass (or per layer).
    """
    if tm is None:
        tm = _device_settings()[0]
    tm = min(tm, _round_up(num_nodes, 128))      # small graphs: one 128-row tile
    n_p = _round_up(num_nodes, tm)               # tm is always a multiple of 128

    src, dst = edge_index[0], edge_index[1]
    counts = jnp.zeros((num_nodes, num_nodes), jnp.int32).at[dst, src].add(1)
    deg = counts.sum(axis=1, keepdims=True).astype(jnp.float32)
    inv_deg = jnp.where(deg > 0.0, 1.0 / deg, 0.0)   # isolated nodes -> zero mean

    # TODO(synk): int8 counts are exact only up to 127 duplicate (dst, src)
    # edges; switch to int16/f32 counts for heavy multigraphs.
    a_p = jnp.zeros((n_p, n_p), jnp.int8).at[:num_nodes, :num_nodes].set(
        counts.astype(jnp.int8))
    inv_p = jnp.zeros((n_p, 1), jnp.float32).at[:num_nodes, :].set(inv_deg)
    return {"a": a_p, "inv_deg": inv_p, "n": num_nodes, "n_p": n_p, "tm": tm}


def gnn_forward(x, graph, params):
    """x: (N, F) f32, graph: output of precompute_graph, params: weight dict."""
    n, f = x.shape
    h = params["wl1"].shape[1]
    n_p, tm = graph["n_p"], graph["tm"]
    f_p = _round_up(f, 128)
    h_p = _round_up(h, 128)
    _, vmem_limit = _device_settings()

    x_p = jnp.zeros((n_p, f_p), jnp.bfloat16).at[:n, :f].set(x.astype(jnp.bfloat16))
    wcat1 = _pack_wcat(params["wl1"], params["wr1"], f_p, h_p)
    wcat2 = _pack_wcat(params["wl2"], params["wr2"], h_p, h_p)
    b1 = jnp.zeros((1, h_p), jnp.float32).at[:, :h].set(params["bl1"])
    b2 = jnp.zeros((1, h_p), jnp.float32).at[:, :h].set(params["bl2"])

    # Prefer single-buffered residents (halves the resident-X / weight VMEM);
    # transparently retry with default double-buffering if this Pallas/Mosaic
    # version rejects pipeline_mode=pl.Buffered(1) on a top-level pallas_call.
    last_err = None
    for single_buf in (True, False):
        try:
            # conv1 + relu (h1 stays bf16 for the layer-2 bf16 MXU aggregation)
            h1 = _sage_layer(graph["a"], graph["inv_deg"], x_p, wcat1, b1,
                             tm=tm, apply_relu=True, out_dtype=jnp.bfloat16,
                             vmem_limit_bytes=vmem_limit,
                             single_buffer_residents=single_buf)
            # conv2
            out = _sage_layer(graph["a"], graph["inv_deg"], h1, wcat2, b2,
                              tm=tm, apply_relu=False, out_dtype=jnp.float32,
                              vmem_limit_bytes=vmem_limit,
                              single_buffer_residents=single_buf)
            return out[:n, :h]
        except Exception as e:  # noqa: BLE001 - fall back once, then re-raise
            last_err = e
    raise last_err


# ----------------------------- reference (pure f32 JAX) ----------------------
def gnn_reference(x, edge_index, params):
    n = x.shape[0]
    src, dst = edge_index[0], edge_index[1]
    adj = jnp.zeros((n, n), dtype=jnp.float32).at[dst, src].add(1.0)
    deg = jnp.sum(adj, axis=1, keepdims=True)
    adj = adj / jnp.maximum(deg, 1.0)

    h = adj @ x @ params["wl1"] + params["bl1"] + x @ params["wr1"]
    h = jnp.maximum(h, 0.0)
    out = adj @ h @ params["wl2"] + params["bl2"] + h @ params["wr2"]
    return out


# ----------------------------- deterministic params --------------------------
def init_params(key, node_features, hidden):
    ks = jax.random.split(key, 6)

    def glorot(k, fan_in, fan_out):
        lim = jnp.sqrt(6.0 / (fan_in + fan_out))
        return jax.random.uniform(k, (fan_in, fan_out), jnp.float32, -lim, lim)

    return {
        "wl1": glorot(ks[0], node_features, hidden),   # lin_l of conv1 (has bias)
        "bl1": 0.1 * jax.random.normal(ks[1], (1, hidden), jnp.float32),
        "wr1": glorot(ks[2], node_features, hidden),   # lin_r of conv1 (no bias)
        "wl2": glorot(ks[3], hidden, hidden),          # lin_l of conv2 (has bias)
        "bl2": 0.1 * jax.random.normal(ks[4], (1, hidden), jnp.float32),
        "wr2": glorot(ks[5], hidden, hidden),          # lin_r of conv2 (no bias)
    }


if __name__ == "__main__":
    NODE_FEATURES = 8
    HIDDEN = 32
    N_NODES = 16
    N_EDGES = 40

    key = jax.random.PRNGKey(0)
    kx, ke, kp = jax.random.split(key, 3)

    x = jax.random.normal(kx, (N_NODES, NODE_FEATURES), dtype=jnp.float32)
    edge_index = jax.random.randint(ke, (2, N_EDGES), 0, N_NODES, dtype=jnp.int32)
    params = init_params(kp, NODE_FEATURES, HIDDEN)

    graph = precompute_graph(edge_index, N_NODES)          # built once, reused
    out = jax.block_until_ready(gnn_forward(x, graph, params))
    ref = gnn_reference(x, edge_index, params)

    assert out.shape == (N_NODES, HIDDEN)
    # bf16 matmul operands (f32 accumulation) -> compare against the pure-f32
    # reference with a bf16-appropriate tolerance.
    err = float(jnp.max(jnp.abs(out - ref)))
    tol = 0.1 + 0.05 * float(jnp.max(jnp.abs(ref)))
    assert err <= tol, f"mismatch vs f32 reference: max_abs_err={err:.4f} tol={tol:.4f}"

    print("KERNEL_OK")
</pallas_src>

<mosaic_0001>
module attributes {stable_mosaic.version = 11 : i64} {
  func.func @_sage_layer_kernel(%arg0: i32, %arg1: memref<128x128xi8, #tpu.memory_space<vmem>>, %arg2: memref<128x1xf32, #tpu.memory_space<vmem>>, %arg3: memref<128x128xbf16, #tpu.memory_space<vmem>>, %arg4: memref<256x128xbf16, #tpu.memory_space<vmem>>, %arg5: memref<1x128xf32, #tpu.memory_space<vmem>>, %arg6: memref<128x128xbf16, #tpu.memory_space<vmem>>) attributes {dimension_semantics = [#tpu.dimension_semantics<parallel>], iteration_bounds = array<i64: 1>, scalar_prefetch = 0 : i64, scratch_operands = 0 : i64, tpu.core_type = #tpu.core_type<tc>, window_params = [{transform_indices = @transform_0, window_bounds = array<i64: 128, 128>}, {transform_indices = @transform_1, window_bounds = array<i64: 128, 1>}, {pipeline_mode = #tpu.pipeline_mode<synchronous>, transform_indices = @transform_2, window_bounds = array<i64: 128, 128>}, {pipeline_mode = #tpu.pipeline_mode<synchronous>, transform_indices = @transform_3, window_bounds = array<i64: 256, 128>}, {pipeline_mode = #tpu.pipeline_mode<synchronous>, transform_indices = @transform_4, window_bounds = array<i64: 1, 128>}, {transform_indices = @transform_5, window_bounds = array<i64: 128, 128>}]} {
    %c0 = arith.constant 0 : index
    %c0_0 = arith.constant 0 : index
    %0 = vector.load %arg1[%c0, %c0_0] : memref<128x128xi8, #tpu.memory_space<vmem>>, vector<128x128xi8>
    %1 = arith.sitofp %0 : vector<128x128xi8> to vector<128x128xbf16>
    %c0_1 = arith.constant 0 : index
    %c0_2 = arith.constant 0 : index
    %2 = vector.load %arg3[%c0_1, %c0_2] : memref<128x128xbf16, #tpu.memory_space<vmem>>, vector<128x128xbf16>
    %cst = arith.constant dense<0.000000e+00> : vector<128x128xf32>
    %3 = tpu.matmul %1, %2, %cst {dimension_numbers = #tpu.dot_dimension_numbers<[1], [0], [0], [1], [0, 0, 1, 1], [], []>} : vector<128x128xbf16>, vector<128x128xbf16>, vector<128x128xf32> -> vector<128x128xf32>
    %c0_3 = arith.constant 0 : index
    %c0_4 = arith.constant 0 : index
    %4 = vector.load %arg2[%c0_3, %c0_4] : memref<128x1xf32, #tpu.memory_space<vmem>>, vector<128x1xf32>
    %5 = vector.broadcast %4 : vector<128x1xf32> to vector<128x128xf32>
    %6 = arith.mulf %3, %5 : vector<128x128xf32>
    %c128_i32 = arith.constant 128 : i32
    %7 = arith.muli %arg0, %c128_i32 : i32
    %8 = tpu.assume_multiple %7, 128 : i32
    %9 = arith.index_cast %8 : i32 to index
    %c0_5 = arith.constant 0 : index
    %10 = vector.load %arg3[%9, %c0_5] : memref<128x128xbf16, #tpu.memory_space<vmem>>, vector<128x128xbf16>
    %11 = arith.truncf %6 : vector<128x128xf32> to vector<128x128xbf16>
    %12 = tpu.concatenate %11, %10 in 1 : vector<128x128xbf16>, vector<128x128xbf16> -> vector<128x256xbf16>
    %c0_6 = arith.constant 0 : index
    %c0_7 = arith.constant 0 : index
    %13 = vector.load %arg4[%c0_6, %c0_7] : memref<256x128xbf16, #tpu.memory_space<vmem>>, vector<256x128xbf16>
    %cst_8 = arith.constant dense<0.000000e+00> : vector<128x128xf32>
    %14 = tpu.matmul %12, %13, %cst_8 {dimension_numbers = #tpu.dot_dimension_numbers<[1], [0], [0], [1], [0, 0, 1, 1], [], []>} : vector<128x256xbf16>, vector<256x128xbf16>, vector<128x128xf32> -> vector<128x128xf32>
    %c0_9 = arith.constant 0 : index
    %c0_10 = arith.constant 0 : index
    %15 = vector.load %arg5[%c0_9, %c0_10] : memref<1x128xf32, #tpu.memory_space<vmem>>, vector<1x128xf32>
    %16 = vector.broadcast %15 : vector<1x128xf32> to vector<128x128xf32>
    %17 = arith.addf %14, %16 : vector<128x128xf32>
    %cst_11 = arith.constant 0.000000e+00 : f32
    %18 = vector.broadcast %cst_11 : f32 to vector<128x128xf32>
    %19 = arith.maximumf %17, %18 : vector<128x128xf32>
    %20 = arith.truncf %19 : vector<128x128xf32> to vector<128x128xbf16>
    %c0_12 = arith.constant 0 : index
    %c0_13 = arith.constant 0 : index
    %21 = vector.load %arg6[%c0_12, %c0_13] : memref<128x128xbf16, #tpu.memory_space<vmem>>, vector<128x128xbf16>
    tpu.vector_store %arg6[%c0_12, %c0_13], %20 {strides = array<i32>} : memref<128x128xbf16, #tpu.memory_space<vmem>>, vector<128x128xbf16>,
    return
  }
  func.func @transform_0(%arg0: i32) -> (i32, i32) {
    %c0_i32 = arith.constant 0 : i32
    %c0_i32_0 = arith.constant 0 : i32
    return %arg0, %c0_i32 : i32, i32
  }
  func.func @transform_1(%arg0: i32) -> (i32, i32) {
    %c0_i32 = arith.constant 0 : i32
    %c0_i32_0 = arith.constant 0 : i32
    return %arg0, %c0_i32 : i32, i32
  }
  func.func @transform_2(%arg0: i32) -> (i32, i32) {
    %c0_i32 = arith.constant 0 : i32
    %c0_i32_0 = arith.constant 0 : i32
    %c0_i32_1 = arith.constant 0 : i32
    return %c0_i32, %c0_i32_0 : i32, i32
  }
  func.func @transform_3(%arg0: i32) -> (i32, i32) {
    %c0_i32 = arith.constant 0 : i32
    %c0_i32_0 = arith.constant 0 : i32
    %c0_i32_1 = arith.constant 0 : i32
    return %c0_i32, %c0_i32_0 : i32, i32
  }
  func.func @transform_4(%arg0: i32) -> (i32, i32) {
    %c0_i32 = arith.constant 0 : i32
    %c0_i32_0 = arith.constant 0 : i32
    %c0_i32_1 = arith.constant 0 : i32
    return %c0_i32, %c0_i32_0 : i32, i32
  }
  func.func @transform_5(%arg0: i32) -> (i32, i32) {
    %c0_i32 = arith.constant 0 : i32
    %c0_i32_0 = arith.constant 0 : i32
    return %arg0, %c0_i32 : i32, i32
  }
}

module attributes {stable_mosaic.version = 11 : i64} {
  func.func @_sage_layer_kernel(%arg0: i32, %arg1: memref<128x128xi8, #tpu.memory_space<vmem>>, %arg2: memref<128x1xf32, #tpu.memory_space<vmem>>, %arg3: memref<128x128xbf16, #tpu.memory_space<vmem>>, %arg4: memref<256x128xbf16, #tpu.memory_space<vmem>>, %arg5: memref<1x128xf32, #tpu.memory_space<vmem>>, %arg6: memref<128x128xbf16, #tpu.memory_space<vmem>>) attributes {dimension_semantics = [#tpu.dimension_semantics<parallel>], iteration_bounds = array<i64: 1>, scalar_prefetch = 0 : i64, scratch_operands = 0 : i64, tpu.core_type = #tpu.core_type<tc>, window_params = [{transform_indices = @transform_0, window_bounds = array<i64: 128, 128>}, {transform_indices = @transform_1, window_bounds = array<i64: 128, 1>}, {pipeline_mode = #tpu.pipeline_mode<synchronous>, transform_indices = @transform_2, window_bounds = array<i64: 128, 128>}, {pipeline_mode = #tpu.pipeline_mode<synchronous>, transform_indices = @transform_3, window_bounds = array<i64: 256, 128>}, {pipeline_mode = #tpu.pipeline_mode<synchronous>, transform_indices = @transform_4, window_bounds = array<i64: 1, 128>}, {transform_indices = @transform_5, window_bounds = array<i64: 128, 128>}]} {
    %c0 = arith.constant 0 : index
    %c0_0 = arith.constant 0 : index
    %0 = vector.load %arg1[%c0, %c0_0] : memref<128x128xi8, #tpu.memory_space<vmem>>, vector<128x128xi8>
    %1 = arith.sitofp %0 : vector<128x128xi8> to vector<128x128xbf16>
    %c0_1 = arith.constant 0 : index
    %c0_2 = arith.constant 0 : index
    %2 = vector.load %arg3[%c0_1, %c0_2] : memref<128x128xbf16, #tpu.memory_space<vmem>>, vector<128x128xbf16>
    %cst = arith.constant dense<0.000000e+00> : vector<128x128xf32>
    %3 = tpu.matmul %1, %2, %cst {dimension_numbers = #tpu.dot_dimension_numbers<[1], [0], [0], [1], [0, 0, 1, 1], [], []>} : vector<128x128xbf16>, vector<128x128xbf16>, vector<128x128xf32> -> vector<128x128xf32>
    %c0_3 = arith.constant 0 : index
    %c0_4 = arith.constant 0 : index
    %4 = vector.load %arg2[%c0_3, %c0_4] : memref<128x1xf32, #tpu.memory_space<vmem>>, vector<128x1xf32>
    %5 = vector.broadcast %4 : vector<128x1xf32> to vector<128x128xf32>
    %6 = arith.mulf %3, %5 : vector<128x128xf32>
    %c128_i32 = arith.constant 128 : i32
    %7 = arith.muli %arg0, %c128_i32 : i32
    %8 = tpu.assume_multiple %7, 128 : i32
    %9 = arith.index_cast %8 : i32 to index
    %c0_5 = arith.constant 0 : index
    %10 = vector.load %arg3[%9, %c0_5] : memref<128x128xbf16, #tpu.memory_space<vmem>>, vector<128x128xbf16>
    %11 = arith.truncf %6 : vector<128x128xf32> to vector<128x128xbf16>
    %12 = tpu.concatenate %11, %10 in 1 : vector<128x128xbf16>, vector<128x128xbf16> -> vector<128x256xbf16>
    %c0_6 = arith.constant 0 : index
    %c0_7 = arith.constant 0 : index
    %13 = vector.load %arg4[%c0_6, %c0_7] : memref<256x128xbf16, #tpu.memory_space<vmem>>, vector<256x128xbf16>
    %cst_8 = arith.constant dense<0.000000e+00> : vector<128x128xf32>
    %14 = tpu.matmul %12, %13, %cst_8 {dimension_numbers = #tpu.dot_dimension_numbers<[1], [0], [0], [1], [0, 0, 1, 1], [], []>} : vector<128x256xbf16>, vector<256x128xbf16>, vector<128x128xf32> -> vector<128x128xf32>
    %c0_9 = arith.constant 0 : index
    %c0_10 = arith.constant 0 : index
    %15 = vector.load %arg5[%c0_9, %c0_10] : memref<1x128xf32, #tpu.memory_space<vmem>>, vector<1x128xf32>
    %16 = vector.broadcast %15 : vector<1x128xf32> to vector<128x128xf32>
    %17 = arith.addf %14, %16 : vector<128x128xf32>
    %cst_11 = arith.constant 0.000000e+00 : f32
    %18 = vector.broadcast %cst_11 : f32 to vector<128x128xf32>
    %19 = arith.maximumf %17, %18 : vector<128x128xf32>
    %20 = arith.truncf %19 : vector<128x128xf32> to vector<128x128xbf16>
    %c0_12 = arith.constant 0 : index
    %c0_13 = arith.constant 0 : index
    %21 = vector.load %arg6[%c0_12, %c0_13] : memref<128x128xbf16, #tpu.memory_space<vmem>>, vector<128x128xbf16>
    tpu.vector_store %arg6[%c0_12, %c0_13], %20 {strides = array<i32>} : memref<128x128xbf16, #tpu.memory_space<vmem>>, vector<128x128xbf16>,
    return
  }
  func.func @transform_0(%arg0: i32) -> (i32, i32) {
    %c0_i32 = arith.constant 0 : i32
    %c0_i32_0 = arith.constant 0 : i32
    return %arg0, %c0_i32 : i32, i32
  }
  func.func @transform_1(%arg0: i32) -> (i32, i32) {
    %c0_i32 = arith.constant 0 : i32
    %c0_i32_0 = arith.constant 0 : i32
    return %arg0, %c0_i32 : i32, i32
  }
  func.func @transform_2(%arg0: i32) -> (i32, i32) {
    %c0_i32 = arith.constant 0 : i32
    %c0_i32_0 = arith.constant 0 : i32
    %c0_i32_1 = arith.constant 0 : i32
    return %c0_i32, %c0_i32_0 : i32, i32
  }
  func.func @transform_3(%arg0: i32) -> (i32, i32) {
    %c0_i32 = arith.constant 0 : i32
    %c0_i32_0 = arith.constant 0 : i32
    %c0_i32_1 = arith.constant 0 : i32
    return %c0_i32, %c0_i32_0 : i32, i32
  }
  func.func @transform_4(%arg0: i32) -> (i32, i32) {
    %c0_i32 = arith.constant 0 : i32
    %c0_i32_0 = arith.constant 0 : i32
    %c0_i32_1 = arith.constant 0 : i32
    return %c0_i32, %c0_i32_0 : i32, i32
  }
  func.func @transform_5(%arg0: i32) -> (i32, i32) {
    %c0_i32 = arith.constant 0 : i32
    %c0_i32_0 = arith.constant 0 : i32
    return %arg0, %c0_i32 : i32, i32
  }
}

</mosaic_0001>

<bundles_post_ra>
// kernel: tpu_custom_call.1
= control target key start
LH: loop header
LB: loop body
LE: loop exit
PB: predicated region body
PF: predicated region fallthrough
CT: control target
= control target key end

     0   :  { %10 = vsyncpa [#allocation3], 0  ;;  %s1246_s0 = inlined_call_operand.hbm [shape: s8[128,128], index: 0, kind: input, shape index: {}]   ;;  %s1247_s1 = inlined_call_operand.vmem [shape: f32[128,1], index: 1, kind: input, shape index: {}]   ;;  %s1248_s2 = inlined_call_operand.hbm [shape: bf16[128,128], index: 2, kind: input, shape index: {}]   ;;  %s1249_s3 = inlined_call_operand.vmem [shape: bf16[256,128], index: 3, kind: input, shape index: {}]   ;;  %s1250_s4 = inlined_call_operand.vmem [shape: f32[1,128], index: 4, kind: input, shape index: {}]   ;;  %s1251_s5 = inlined_call_operand.hbm [shape: bf16[128,128], index: 5, kind: output, shape index: {}]  }
   0x1   :  { %11 = vsyncpa [#allocation6], 0 }
   0x2   :  { %12 = vsyncpa [#allocation4], 0  ;;  %s17_s20 = sshll.u32 %s1246_s0, 4  ;;  %s1076_s21 = smov [#allocation2]   ;;  %s18_s20 = int_to_ptr.hbm [resolvable:$true] %s17_s20 }
   0x3   :  { %s19_s22 = sshll.u32 %s1076_s21, 4  ;;  %s32_s25 = sshll.u32 %s1248_s2, 4  ;;  %s20_s22 = int_to_ptr.vmem [resolvable:$true] %s19_s22  ;;  %s33_s25 = int_to_ptr.hbm [resolvable:$true] %s32_s25 }
   0x4   :  { %s1077_s26 = smov 128   ;;  %s1078_s27 = smov 8  }
   0x5   :  { %25 = dma.hbm_to_vmem [thread:$0]  %s18_s20, 512, %s20_s22, [#allocation3], %s1077_s26, %s1077_s26, %s1078_s27  }
   0x6   :  { %s1079_s28 = smov [#allocation5]   ;;  %s1080_s30 = smov 64  }
   0x7   :  { %s34_s29 = sshll.u32 %s1079_s28, 4  ;;  %s1081_s6 = smov 4   ;;  %s35_s29 = int_to_ptr.vmem [resolvable:$true] %s34_s29 }
   0x8   :  { %40 = dma.hbm_to_vmem [thread:$0]  %s33_s25, 1024, %s35_s29, [#allocation6], %s1080_s30, %s1080_s30, %s1081_s6  }
   0x9   :  { %1070 = dma.done.wait [#allocation3], 512  }
   0xa   :  { %1071 = vsyncadd [#allocation3], 4294966784 }
   0xb   :  { %1072 = dma.done.wait [#allocation6], 1024  }
   0xc   :  { %1073 = vsyncadd [#allocation6], 4294966272  ;;  %v1082_v0 = vmov 0   ;;  %v890_v1 = vld [vmem:[#allocation5 + $0x38] sm:$0xff]  ;;  %v210_v2 = vld [vmem:[%s1247_s1] sm:$0xff]  ;;  %s739_s21 = sshll.u32 %s1251_s5, 4  ;;  %s740_s21 = int_to_ptr.hbm [resolvable:$true] %s739_s21 }
   0xd   :  { %994 = vset.pattern.permute.xlu0 %v1082_v0  ;;  %995 = vset.pattern.permute.xlu1 %v1082_v0  ;;  %v889_v3 = vld [vmem:[#allocation5 + $0x30] sm:$0xff]  ;;  %v888_v5 = vld [vmem:[#allocation5 + $0x28] sm:$0xff]  ;;  %v213_v7 = vld [vmem:[%s1247_s1 + $0x18] sm:$0xff] }
   0xe   :  { %996 = vset.pattern.permute.xlu2 %v1082_v0  ;;  %228 = vperm.xlu0 %994, %v210_v2   ;;  %v212_v4 = vld [vmem:[%s1247_s1 + $0x10] sm:$0xff]  ;;  %v211_v6 = vld [vmem:[%s1247_s1 + $0x8] sm:$0xff]  ;;  %v887_v8 = vld [vmem:[#allocation5 + $0x20] sm:$0xff] }
   0xf   :  { %161 = vmatpush.bf16.msra.mxu0 %v890_v1  ;;  %962 = vmatpush.bf16.msra.mxu3 %v890_v1  ;;  %v886_v9 = vld [vmem:[#allocation5 + $0x18] sm:$0xff]  ;;  %v214_v10 = vld [vmem:[%s1247_s1 + $0x20] sm:$0xff]  ;;  %v215_v11 = vld [vmem:[%s1247_s1 + $0x28] sm:$0xff] }
  0x10   :  { %238 = vperm.xlu1 %995, %v212_v4   ;;  %v222_v12 = vld [vmem:[%s1247_s1 + $0x60] sm:$0xff]  ;;  %v885_v13 = vld [vmem:[#allocation5 + $0x10] sm:$0xff]  ;;  %v56_v15 = vld [vmem:[#allocation2 + $0x18] sm:$0xff] }
  0x11   :  { %v53_v14 = vld [vmem:[#allocation2] sm:$0xff]  ;;  %288 = vperm.xlu2 %996, %v222_v12   ;;  %v69_v18 = vunpack.c.0.s8 %v56_v15  ;;  %v70_v19 = vunpack.c.1.s8 %v56_v15  ;;  %v884_v20 = vld [vmem:[#allocation5 + $0x8] sm:$0xff]  ;;  %v225_v21 = vld [vmem:[%s1247_s1 + $0x78] sm:$0xff]  ;;  %v71_v35 = vunpack.c.2.s8 %v56_v15  ;;  %v72_v36 = vunpack.c.3.s8 %v56_v15 }
  0x12   :  { %v57_v16 = vunpack.c.0.s8 %v53_v14  ;;  %v58_v17 = vunpack.c.1.s8 %v53_v14  ;;  %v216_v26 = vld [vmem:[%s1247_s1 + $0x30] sm:$0xff]  ;;  %v883_v27 = vld [vmem:[#allocation5] sm:$0xff]  ;;  %v219_v31 = vld [vmem:[%s1247_s1 + $0x48] sm:$0xff]  ;;  %v59_v33 = vunpack.c.2.s8 %v53_v14  ;;  %v60_v34 = vunpack.c.3.s8 %v53_v14 }
  0x13   :  { %162 = vmatpush.bf16.msra.mxu0 %v889_v3  ;;  %963 = vmatpush.bf16.msra.mxu3 %v889_v3  ;;  %v85_v24 = vcvt.s32.f32 %v69_v18  ;;  %v86_v25 = vcvt.s32.f32 %v70_v19  ;;  %v218_v30 = vld [vmem:[%s1247_s1 + $0x40] sm:$0xff]  ;;  %v223_v32 = vld [vmem:[%s1247_s1 + $0x68] sm:$0xff]  ;;  %v221_v37 = vld [vmem:[%s1247_s1 + $0x58] sm:$0xff]  ;;  %v87_v41 = vcvt.s32.f32 %v71_v35  ;;  %v88_v42 = vcvt.s32.f32 %v72_v36 }
  0x14   :  { %v73_v22 = vcvt.s32.f32 %v57_v16  ;;  %v74_v23 = vcvt.s32.f32 %v58_v17  ;;  %v224_v38 = vld [vmem:[%s1247_s1 + $0x70] sm:$0xff]  ;;  %v75_v39 = vcvt.s32.f32 %v59_v33  ;;  %v76_v40 = vcvt.s32.f32 %v60_v34  ;;  %v217_v45 = vld [vmem:[%s1247_s1 + $0x38] sm:$0xff]  ;;  %v54_v46 = vld [vmem:[#allocation2 + $0x8] sm:$0xff] }
  0x15   :  { %v95_v29 = vpack.c.bf16 %v86_v25, %v85_v24  ;;  %v96_v44 = vpack.c.bf16 %v88_v42, %v87_v41  ;;  %v61_v47 = vunpack.c.0.s8 %v54_v46  ;;  %v62_v48 = vunpack.c.1.s8 %v54_v46  ;;  %v220_v49 = vld [vmem:[%s1247_s1 + $0x50] sm:$0xff]  ;;  %v914_v63 = vld [vmem:[%s1249_s3 + $0x78] sm:$0xff]  ;;  %v912_v4 = vld [vmem:[%s1249_s3 + $0x68] sm:$0xff] }
  0x16   :  { %233 = vperm.xlu0 %994, %v211_v6   ;;  %v89_v28 = vpack.c.bf16 %v74_v23, %v73_v22  ;;  %v90_v43 = vpack.c.bf16 %v76_v40, %v75_v39  ;;  %v63_v53 = vunpack.c.2.s8 %v54_v46  ;;  %v64_v54 = vunpack.c.3.s8 %v54_v46  ;;  %v55_v58 = vld [vmem:[#allocation2 + $0x10] sm:$0xff]  ;;  %636 = vmatpush.bf16.msra.mxu2 %v914_v63  ;;  %v904_v12 = vld [vmem:[%s1249_s3 + $0x28] sm:$0xff]  ;;  %v903_v14 = vld [vmem:[%s1249_s3 + $0x20] sm:$0xff] }
  0x17   :  { %163 = vmatpush.bf16.msra.mxu0 %v888_v5  ;;  %964 = vmatpush.bf16.msra.mxu3 %v888_v5  ;;  %v77_v50 = vcvt.s32.f32 %v61_v47  ;;  %v78_v51 = vcvt.s32.f32 %v62_v48  ;;  %v65_v59 = vunpack.c.0.s8 %v55_v58  ;;  %v66_v60 = vunpack.c.1.s8 %v55_v58  ;;  %v913_v1 = vld [vmem:[%s1249_s3 + $0x70] sm:$0xff]  ;;  %v908_v15 = vld [vmem:[%s1249_s3 + $0x48] sm:$0xff]  ;;  %v902_v16 = vld [vmem:[%s1249_s3 + $0x18] sm:$0xff] }
  0x18   :  { %243 = vperm.xlu1 %995, %v213_v7   ;;  %v79_v55 = vcvt.s32.f32 %v63_v53  ;;  %v80_v56 = vcvt.s32.f32 %v64_v54  ;;  %v67_v2 = vunpack.c.2.s8 %v55_v58  ;;  %v68_v3 = vunpack.c.3.s8 %v55_v58  ;;  %v906_v7 = vld [vmem:[%s1249_s3 + $0x38] sm:$0xff]  ;;  %v907_v17 = vld [vmem:[%s1249_s3 + $0x40] sm:$0xff]  ;;  %v901_v19 = vld [vmem:[%s1249_s3 + $0x10] sm:$0xff] }
  0x19   :  { %293 = vperm.xlu2 %996, %v223_v32   ;;  %v91_v52 = vpack.c.bf16 %v78_v51, %v77_v50  ;;  %v81_v61 = vcvt.s32.f32 %v65_v59  ;;  %v82_v62 = vcvt.s32.f32 %v66_v60  ;;  %587 = vmatpush.bf16.msra.mxu1 %v906_v7  ;;  %v891_v18 = vld [vmem:[#allocation5] sm:$0xff]  ;;  %v892_v22 = vld [vmem:[#allocation5 + $0x8] sm:$0xff]  ;;  %v893_v25 = vld [vmem:[#allocation5 + $0x10] sm:$0xff] }
  0x1a   :  { %v92_v57 = vpack.c.bf16 %v80_v56, %v79_v55  ;;  %637 = vmatpush.bf16.msra.mxu2 %v913_v1  ;;  %v83_v5 = vcvt.s32.f32 %v67_v2  ;;  %v84_v6 = vcvt.s32.f32 %v68_v3  ;;  %v894_v47 = vld [vmem:[#allocation5 + $0x18] sm:$0xff] }
  0x1b   :  { %164 = vmatpush.bf16.msra.mxu0 %v887_v8  ;;  %965 = vmatpush.bf16.msra.mxu3 %v887_v8  ;;  %v93_v0 = vpack.c.bf16 %v82_v62, %v81_v61  ;;  %v911_v8 = vld [vmem:[%s1249_s3 + $0x60] sm:$0xff] }
  0x1e   :  { %248 = vperm.xlu0 %994, %v214_v10   ;;  %638 = vmatpush.bf16.msra.mxu2 %v912_v4  ;;  %v905_v10 = vld [vmem:[%s1249_s3 + $0x30] sm:$0xff] }
  0x1f   :  { %165 = vmatpush.bf16.msra.mxu0 %v886_v9  ;;  %966 = vmatpush.bf16.msra.mxu3 %v886_v9  ;;  %v94_v9 = vpack.c.bf16 %v84_v6, %v83_v5  ;;  %v895_v6 = vld [vmem:[#allocation5 + $0x20] sm:$0xff] }
  0x20   :  { %253 = vperm.xlu1 %995, %v215_v11   ;;  %v910_v11 = vld [vmem:[%s1249_s3 + $0x58] sm:$0xff]  ;;  %588 = vmatpush.bf16.msra.mxu1 %v905_v10 }
  0x21   :  { %298 = vperm.xlu2 %996, %v224_v38  }
  0x22   :  { %639 = vmatpush.bf16.msra.mxu2 %v911_v8 }
  0x23   :  { %166 = vmatpush.bf16.msra.mxu0 %v885_v13  ;;  %967 = vmatpush.bf16.msra.mxu3 %v885_v13  ;;  %v909_v13 = vld [vmem:[%s1249_s3 + $0x50] sm:$0xff] }
  0x24   :  { %589 = vmatpush.bf16.msra.mxu1 %v904_v12 }
  0x26   :  { %303 = vperm.xlu0 %994, %v225_v21   ;;  %640 = vmatpush.bf16.msra.mxu2 %v910_v11  ;;  %v899_v21 = vld [vmem:[%s1249_s3] sm:$0xff] }
  0x27   :  { %167 = vmatpush.bf16.msra.mxu0 %v884_v20  ;;  %968 = vmatpush.bf16.msra.mxu3 %v884_v20  ;;  %v900_v20 = vld [vmem:[%s1249_s3 + $0x8] sm:$0xff] }
  0x28   :  { %258 = vperm.xlu1 %995, %v216_v26   ;;  %590 = vmatpush.bf16.msra.mxu1 %v903_v14 }
  0x29   :  { %263 = vperm.xlu2 %996, %v217_v45  }
  0x2a   :  { %641 = vmatpush.bf16.msra.mxu2 %v909_v13 }
  0x2b   :  { %168 = vmatpush.bf16.msra.mxu0 %v883_v27  ;;  %969 = vmatpush.bf16.msra.mxu3 %v883_v27 }
  0x2c   :  { %591 = vmatpush.bf16.msra.mxu1 %v902_v16 }
  0x2e   :  { %169 = vmatmul.bf16.vlgmr.msra.gmra.mxu0 %v89_v28  ;;  %199 = vmatmul.bf16.vlgmr.msra.gmra.mxu3 %v95_v29 }
  0x2f   :  { %268 = vperm.xlu0 %994, %v218_v30   ;;  %970 = vmatpush.bf16.msrb.mxu3 %v906_v7 }
  0x30   :  { %273 = vperm.xlu1 %995, %v219_v31   ;;  %642 = vmatpush.bf16.msra.mxu2 %v908_v15 }
  0x31   :  { %278 = vperm.xlu2 %996, %v220_v49   ;;  %592 = vmatpush.bf16.msra.mxu1 %v901_v19 }
  0x33   :  { %971 = vmatpush.bf16.msrb.mxu3 %v905_v10 }
  0x34   :  { %643 = vmatpush.bf16.msra.mxu2 %v907_v17 }
  0x35   :  { %593 = vmatpush.bf16.msra.mxu1 %v900_v20 }
  0x37   :  { %283 = vperm.xlu0 %994, %v221_v37   ;;  %972 = vmatpush.bf16.msrb.mxu3 %v904_v12 }
  0x38   :  { %644 = vmatmul.bf16.vlgmr.msra.gmra.mxu2 %v891_v18  ;;  %v897_v18 = vld [vmem:[#allocation5 + $0x30] sm:$0xff] }
  0x39   :  { %594 = vmatpush.bf16.msra.mxu1 %v899_v21 }
  0x3b   :  { %973 = vmatpush.bf16.msrb.mxu3 %v903_v14 }
  0x3e   :  { %174 = vmatmul.bf16.gmra.mxu0 %v90_v43  ;;  %204 = vmatmul.bf16.gmra.mxu3 %v96_v44 }
  0x3f   :  { %974 = vmatpush.bf16.msrb.mxu3 %v902_v16 }
  0x43   :  { %975 = vmatpush.bf16.msrb.mxu3 %v901_v19  ;;  %v896_v19 = vld [vmem:[#allocation5 + $0x28] sm:$0xff] }
  0x47   :  { %976 = vmatpush.bf16.msrb.mxu3 %v900_v20 }
  0x48   :  { %649 = vmatmul.bf16.gmra.mxu2 %v892_v22 }
  0x4b   :  { %977 = vmatpush.bf16.msrb.mxu3 %v899_v21 }
  0x4e   :  { %179 = vmatmul.bf16.gmra.mxu0 %v91_v52 }
  0x4f   :  { %978 = vmatpush.bf16.msra.mxu3 %v914_v63 }
  0x53   :  { %979 = vmatpush.bf16.msra.mxu3 %v913_v1 }
  0x57   :  { %980 = vmatpush.bf16.msra.mxu3 %v912_v4 }
  0x58   :  { %654 = vmatmul.bf16.gmra.mxu2 %v893_v25 }
  0x5b   :  { %981 = vmatpush.bf16.msra.mxu3 %v911_v8 }
  0x5e   :  { %184 = vmatmul.bf16.gmra.mxu0 %v92_v57 }
  0x5f   :  { %982 = vmatpush.bf16.msra.mxu3 %v910_v11 }
  0x63   :  { %983 = vmatpush.bf16.msra.mxu3 %v909_v13 }
  0x67   :  { %984 = vmatpush.bf16.msra.mxu3 %v908_v15 }
  0x68   :  { %659 = vmatmul.bf16.gmra.mxu2 %v894_v47 }
  0x6b   :  { %v289_v26 = vpop.permute.xlu2 %288  ;;  %985 = vmatpush.bf16.msra.mxu3 %v907_v17 }
  0x6e   :  { %189 = vmatmul.bf16.gmra.mxu0 %v93_v0 }
  0x73   :  { %v294_v39 = vpop.permute.xlu2 %293 }
  0x78   :  { %664 = vmatmul.bf16.gmra.mxu2 %v895_v6 }
  0x7b   :  { %v299_v56 = vpop.permute.xlu2 %298 }
  0x7e   :  { %194 = vmatmul.bf16.gmra.mxu0 %v94_v9 }
  0x80   :  { %v229_v23 = vpop.permute.xlu0 %228 }
  0x82   :  { %v239_v35 = vpop.permute.xlu1 %238 }
  0x83   :  { %v264_v22 = vpop.permute.xlu2 %263 }
  0x88   :  { %v234_v29 = vpop.permute.xlu0 %233  ;;  %669 = vmatmul.bf16.gmra.mxu2 %v896_v19 }
  0x8a   :  { %v244_v52 = vpop.permute.xlu1 %243 }
  0x90   :  { %v249_v48 = vpop.permute.xlu0 %248 }
  0x92   :  { %v254_v9 = vpop.permute.xlu1 %253 }
  0x98   :  { %v304_v61 = vpop.permute.xlu0 %303 }
  0x9a   :  { %v259_v20 = vpop.permute.xlu1 %258 }
  0xab   :  { %v170_v24 = vpop.f32.mrf.mxu0 }
  0xac   :  { %v306_v27 = vmul.f32 %v229_v23, %v170_v24 }
  0xae   :  { %v343_v31 = vpack.c.bf16 %v306_v27, %v306_v27 }
  0xb0   :  { %v375_v36 = vunpack.c.l.b16 %v343_v31  ;;  %v898_v31 = vld [vmem:[#allocation5 + $0x38] sm:$0xff] }
  0xb1   :  { %v200_v28 = vpop.f32.mrf.mxu3 }
  0xb2   :  { %v318_v32 = vmul.f32 %v289_v26, %v200_v28 }
  0xb3   :  { %v172_v30 = vpop.f32.mrf.mxu0 }
  0xb4   :  { %v307_v33 = vmul.f32 %v234_v29, %v172_v30  ;;  %v355_v37 = vpack.c.bf16 %v318_v32, %v318_v32  ;;  %v269_v32 = vpop.permute.xlu0 %268 }
  0xb6   :  { %v344_v34 = vpack.c.bf16 %v307_v33, %v307_v33  ;;  %v387_v44 = vunpack.c.l.b16 %v355_v37 }
  0xb8   :  { %v376_v38 = vunpack.c.l.b16 %v344_v34  ;;  %v274_v34 = vpop.permute.xlu1 %273 }
  0xb9   :  { %v202_v40 = vpop.f32.mrf.mxu3 }
  0xba   :  { %v319_v41 = vmul.f32 %v294_v39, %v202_v40  ;;  %v391_v42 = vpack.c.b16 %v376_v38, %v375_v36 }
  0xbb   :  { %v175_v43 = vpop.f32.mrf.mxu0 }
  0xbc   :  { %v356_v45 = vpack.c.bf16 %v319_v41, %v319_v41  ;;  %595 = vmatmul.bf16.vlgmr.msra.gmra.mxu1 %v391_v42  ;;  %v308_v50 = vmul.f32 %v239_v35, %v175_v43  ;;  %v279_v43 = vpop.permute.xlu2 %278 }
  0xbe   :  { %v388_v46 = vunpack.c.l.b16 %v356_v45  ;;  %v345_v54 = vpack.c.bf16 %v308_v50, %v308_v50  ;;  %v284_v45 = vpop.permute.xlu0 %283 }
  0xc0   :  { %v397_v49 = vpack.c.b16 %v388_v46, %v387_v44  ;;  %v377_v59 = vunpack.c.l.b16 %v345_v54 }
  0xc1   :  { %v205_v51 = vpop.f32.mrf.mxu3 }
  0xc2   :  { %625 = vmatmul.bf16.vlgmr.msrb.gmra.mxu3 %v397_v49  ;;  %v320_v57 = vmul.f32 %v299_v56, %v205_v51 }
  0xc3   :  { %v177_v53 = vpop.f32.mrf.mxu0 }
  0xc4   :  { %v309_v55 = vmul.f32 %v244_v52, %v177_v53  ;;  %v357_v63 = vpack.c.bf16 %v320_v57, %v320_v57  ;;  %v645_v53 = vpop.f32.mrf.mxu2  ;;  %v1222_v57 = vld [vmem:[%s1250_s4] ss:$0 sm:$0xff]  ;;  %s1083_s4 = smov [#allocation7]  }
  0xc5   :  { %s737_s18 = sshll.u32 %s1083_s4, 4  ;;  %s738_s18 = int_to_ptr.vmem [resolvable:$true] %s737_s18 }
  0xc6   :  { %v346_v58 = vpack.c.bf16 %v309_v55, %v309_v55  ;;  %v389_v4 = vunpack.c.l.b16 %v357_v63 }
  0xc8   :  { %v378_v60 = vunpack.c.l.b16 %v346_v58 }
  0xc9   :  { %v207_v62 = vpop.f32.mrf.mxu3 }
  0xca   :  { %v321_v0 = vmul.f32 %v304_v61, %v207_v62  ;;  %v392_v1 = vpack.c.b16 %v378_v60, %v377_v59 }
  0xcb   :  { %v180_v2 = vpop.f32.mrf.mxu0 }
  0xcc   :  { %v358_v3 = vpack.c.bf16 %v321_v0, %v321_v0  ;;  %600 = vmatmul.bf16.gmra.mxu1 %v392_v1  ;;  %v310_v7 = vmul.f32 %v249_v48, %v180_v2  ;;  %v647_v54 = vpop.f32.mrf.mxu2 }
  0xce   :  { %v390_v5 = vunpack.c.l.b16 %v358_v3  ;;  %v347_v11 = vpack.c.bf16 %v310_v7, %v310_v7 }
  0xd0   :  { %v398_v8 = vpack.c.b16 %v390_v5, %v389_v4  ;;  %v379_v14 = vunpack.c.l.b16 %v347_v11 }
  0xd2   :  { %630 = vmatmul.bf16.gmra.mxu3 %v398_v8 }
  0xd3   :  { %v182_v10 = vpop.f32.mrf.mxu0 }
  0xd4   :  { %v311_v12 = vmul.f32 %v254_v9, %v182_v10  ;;  %v650_v56 = vpop.f32.mrf.mxu2 }
  0xd6   :  { %v348_v13 = vpack.c.bf16 %v311_v12, %v311_v12 }
  0xd8   :  { %v380_v15 = vunpack.c.l.b16 %v348_v13 }
  0xda   :  { %v393_v16 = vpack.c.b16 %v380_v15, %v379_v14 }
  0xdb   :  { %v185_v17 = vpop.f32.mrf.mxu0 }
  0xdc   :  { %605 = vmatmul.bf16.gmra.mxu1 %v393_v16  ;;  %v312_v21 = vmul.f32 %v259_v20, %v185_v17  ;;  %v652_v62 = vpop.f32.mrf.mxu2 }
  0xde   :  { %v349_v24 = vpack.c.bf16 %v312_v21, %v312_v21 }
  0xe0   :  { %v381_v27 = vunpack.c.l.b16 %v349_v24 }
  0xe2   :  { %674 = vmatmul.bf16.vlgmr.msra.gmra.mxu3 %v897_v18 }
  0xe3   :  { %v187_v23 = vpop.f32.mrf.mxu0 }
  0xe4   :  { %v313_v25 = vmul.f32 %v264_v22, %v187_v23  ;;  %v655_v6 = vpop.f32.mrf.mxu2 }
  0xe6   :  { %v350_v26 = vpack.c.bf16 %v313_v25, %v313_v25 }
  0xe8   :  { %v382_v28 = vunpack.c.l.b16 %v350_v26 }
  0xea   :  { %v394_v29 = vpack.c.b16 %v382_v28, %v381_v27 }
  0xeb   :  { %v190_v30 = vpop.f32.mrf.mxu0 }
  0xec   :  { %610 = vmatmul.bf16.gmra.mxu1 %v394_v29  ;;  %v314_v33 = vmul.f32 %v269_v32, %v190_v30  ;;  %v657_v15 = vpop.f32.mrf.mxu2 }
  0xee   :  { %v351_v36 = vpack.c.bf16 %v314_v33, %v314_v33 }
  0xf0   :  { %v383_v39 = vunpack.c.l.b16 %v351_v36 }
  0xf2   :  { %679 = vmatmul.bf16.gmra.mxu3 %v898_v31 }
  0xf3   :  { %v192_v35 = vpop.f32.mrf.mxu0 }
  0xf4   :  { %v315_v37 = vmul.f32 %v274_v34, %v192_v35  ;;  %v660_v21 = vpop.f32.mrf.mxu2 }
  0xf6   :  { %v352_v38 = vpack.c.bf16 %v315_v37, %v315_v37 }
  0xf8   :  { %v384_v40 = vunpack.c.l.b16 %v352_v38 }
  0xfa   :  { %v395_v41 = vpack.c.b16 %v384_v40, %v383_v39 }
  0xfb   :  { %v195_v42 = vpop.f32.mrf.mxu0 }
  0xfc   :  { %615 = vmatmul.bf16.gmra.mxu1 %v395_v41  ;;  %v316_v44 = vmul.f32 %v279_v43, %v195_v42  ;;  %v662_v31 = vpop.f32.mrf.mxu2 }
  0xfe   :  { %v353_v47 = vpack.c.bf16 %v316_v44, %v316_v44 }
 0x100   :  { %v385_v50 = vunpack.c.l.b16 %v353_v47 }
 0x103   :  { %v197_v46 = vpop.f32.mrf.mxu0 }
 0x104   :  { %v317_v48 = vmul.f32 %v284_v45, %v197_v46  ;;  %v665_v44 = vpop.f32.mrf.mxu2 }
 0x106   :  { %v354_v49 = vpack.c.bf16 %v317_v48, %v317_v48 }
 0x108   :  { %v386_v51 = vunpack.c.l.b16 %v354_v49 }
 0x10a   :  { %v396_v52 = vpack.c.b16 %v386_v51, %v385_v50 }
 0x10c   :  { %620 = vmatmul.bf16.gmra.mxu1 %v396_v52 }
 0x139   :  { %v596_v55 = vpop.f32.mrf.mxu1 }
 0x13a   :  { %v597_v58 = vadd.f32 %v1222_v57, %v596_v55 }
 0x13c   :  { %v646_v60 = vadd.f32 %v645_v53, %v597_v58 }
 0x13e   :  { %v685_v1 = vmax.f32 %v646_v60, 0.0 }
 0x141   :  { %v598_v59 = vpop.f32.mrf.mxu1 }
 0x142   :  { %v599_v61 = vadd.f32 %v1222_v57, %v598_v59 }
 0x144   :  { %v648_v63 = vadd.f32 %v647_v54, %v599_v61 }
 0x145   :  { %v626_v0 = vpop.f32.mrf.mxu3 }
 0x146   :  { %v686_v2 = vmax.f32 %v648_v63, 0.0  ;;  %v627_v30 = vadd.f32 %v1222_v57, %v626_v0 }
 0x148   :  { %v918_v3 = vpack.c.bf16 %v686_v2, %v685_v1 }
 0x149   :  { %v601_v4 = vpop.f32.mrf.mxu1 }
 0x14a   :  { %919 = vst [vmem:[#allocation7] sm:$0xff] %v918_v3   ;;  %v602_v7 = vadd.f32 %v1222_v57, %v601_v4 }
 0x14c   :  { %v651_v9 = vadd.f32 %v650_v56, %v602_v7  ;;  %v667_v56 = vpop.f32.mrf.mxu2 }
 0x14d   :  { %v628_v5 = vpop.f32.mrf.mxu3 }
 0x14e   :  { %v687_v13 = vmax.f32 %v651_v9, 0.0  ;;  %v629_v32 = vadd.f32 %v1222_v57, %v628_v5 }
 0x151   :  { %v603_v8 = vpop.f32.mrf.mxu1 }
 0x152   :  { %v604_v10 = vadd.f32 %v1222_v57, %v603_v8 }
 0x154   :  { %v653_v11 = vadd.f32 %v652_v62, %v604_v10  ;;  %v670_v4 = vpop.f32.mrf.mxu2 }
 0x155   :  { %v631_v12 = vpop.f32.mrf.mxu3 }
 0x156   :  { %v688_v14 = vmax.f32 %v653_v11, 0.0  ;;  %v632_v50 = vadd.f32 %v1222_v57, %v631_v12 }
 0x158   :  { %v923_v16 = vpack.c.bf16 %v688_v14, %v687_v13 }
 0x159   :  { %v606_v17 = vpop.f32.mrf.mxu1 }
 0x15a   :  { %955 = vst [vmem:[#allocation7 + $0x8] sm:$0xff] %v923_v16   ;;  %v607_v19 = vadd.f32 %v1222_v57, %v606_v17 }
 0x15c   :  { %v656_v22 = vadd.f32 %v655_v6, %v607_v19  ;;  %v672_v10 = vpop.f32.mrf.mxu2 }
 0x15d   :  { %v633_v18 = vpop.f32.mrf.mxu3 }
 0x15e   :  { %v689_v26 = vmax.f32 %v656_v22, 0.0  ;;  %v634_v51 = vadd.f32 %v1222_v57, %v633_v18 }
 0x161   :  { %v608_v20 = vpop.f32.mrf.mxu1 }
 0x162   :  { %v609_v23 = vadd.f32 %v1222_v57, %v608_v20 }
 0x164   :  { %v658_v24 = vadd.f32 %v657_v15, %v609_v23 }
 0x165   :  { %v675_v25 = vpop.f32.mrf.mxu3 }
 0x166   :  { %v690_v27 = vmax.f32 %v658_v24, 0.0  ;;  %v676_v33 = vadd.f32 %v675_v25, %v627_v30 }
 0x168   :  { %v928_v28 = vpack.c.bf16 %v690_v27, %v689_v26  ;;  %v697_v37 = vmax.f32 %v676_v33, 0.0 }
 0x169   :  { %v611_v29 = vpop.f32.mrf.mxu1 }
 0x16a   :  { %956 = vst [vmem:[#allocation7 + $0x10] sm:$0xff] %v928_v28   ;;  %v612_v35 = vadd.f32 %v1222_v57, %v611_v29 }
 0x16c   :  { %v661_v40 = vadd.f32 %v660_v21, %v612_v35 }
 0x16d   :  { %v677_v34 = vpop.f32.mrf.mxu3 }
 0x16e   :  { %v678_v36 = vadd.f32 %v677_v34, %v629_v32  ;;  %v691_v46 = vmax.f32 %v661_v40, 0.0 }
 0x170   :  { %v698_v38 = vmax.f32 %v678_v36, 0.0 }
 0x171   :  { %v613_v39 = vpop.f32.mrf.mxu1 }
 0x172   :  { %v948_v41 = vpack.c.bf16 %v698_v38, %v697_v37  ;;  %v614_v42 = vadd.f32 %v1222_v57, %v613_v39 }
 0x174   :  { %960 = vst [vmem:[#allocation7 + $0x30] sm:$0xff] %v948_v41   ;;  %v663_v43 = vadd.f32 %v662_v31, %v614_v42 }
 0x175   :  { %v680_v45 = vpop.f32.mrf.mxu3 }
 0x176   :  { %v692_v47 = vmax.f32 %v663_v43, 0.0  ;;  %v681_v52 = vadd.f32 %v680_v45, %v632_v50 }
 0x178   :  { %v933_v48 = vpack.c.bf16 %v692_v47, %v691_v46  ;;  %v699_v58 = vmax.f32 %v681_v52, 0.0 }
 0x179   :  { %v616_v49 = vpop.f32.mrf.mxu1 }
 0x17a   :  { %957 = vst [vmem:[#allocation7 + $0x18] sm:$0xff] %v933_v48   ;;  %v617_v54 = vadd.f32 %v1222_v57, %v616_v49 }
 0x17c   :  { %v666_v61 = vadd.f32 %v665_v44, %v617_v54 }
 0x17d   :  { %v682_v53 = vpop.f32.mrf.mxu3 }
 0x17e   :  { %v683_v55 = vadd.f32 %v682_v53, %v634_v51  ;;  %v693_v1 = vmax.f32 %v666_v61, 0.0 }
 0x180   :  { %v700_v59 = vmax.f32 %v683_v55, 0.0 }
 0x181   :  { %v618_v60 = vpop.f32.mrf.mxu1 }
 0x182   :  { %v953_v62 = vpack.c.bf16 %v700_v59, %v699_v58  ;;  %v619_v63 = vadd.f32 %v1222_v57, %v618_v60 }
 0x184   :  { %961 = vst [vmem:[#allocation7 + $0x38] sm:$0xff] %v953_v62   ;;  %v668_v0 = vadd.f32 %v667_v56, %v619_v63 }
 0x186   :  { %v694_v2 = vmax.f32 %v668_v0, 0.0 }
 0x188   :  { %v938_v3 = vpack.c.bf16 %v694_v2, %v693_v1 }
 0x189   :  { %v621_v5 = vpop.f32.mrf.mxu1 }
 0x18a   :  { %958 = vst [vmem:[#allocation7 + $0x20] sm:$0xff] %v938_v3   ;;  %v622_v6 = vadd.f32 %v1222_v57, %v621_v5 }
 0x18c   :  { %v671_v8 = vadd.f32 %v670_v4, %v622_v6 }
 0x18e   :  { %v695_v12 = vmax.f32 %v671_v8, 0.0 }
 0x191   :  { %v623_v7 = vpop.f32.mrf.mxu1 }
 0x192   :  { %v624_v9 = vadd.f32 %v1222_v57, %v623_v7 }
 0x194   :  { %v673_v11 = vadd.f32 %v672_v10, %v624_v9 }
 0x196   :  { %v696_v13 = vmax.f32 %v673_v11, 0.0 }
 0x198   :  { %v943_v14 = vpack.c.bf16 %v696_v13, %v695_v12 }
 0x19a   :  { %959 = vst [vmem:[#allocation7 + $0x28] sm:$0xff] %v943_v14  }
 0x19b   :  { %745 = dma.vmem_to_hbm [thread:$0]  %s738_s18, 1024, %s740_s21, [#allocation4], %s1080_s30, %s1080_s30, %s1081_s6  }
 0x19c   :  { %1074 = dma.done.wait [#allocation4], 1024  }
 0x19d   :  { %1075 = vsyncadd [#allocation4], 4294966272 }
 0x19e   :  { %750 = vsyncpa [#allocation3], 1 }
 0x19f   :  { %751 = vsyncpa [#allocation6], 1 }
 0x1a0   :  { %752 = vsyncpa [#allocation4], 1 }

// kernel: tpu_custom_call.1
= control target key start
LH: loop header
LB: loop body
LE: loop exit
PB: predicated region body
PF: predicated region fallthrough
CT: control target
= control target key end

     0   :  { %10 = vsyncpa [#allocation3], 0  ;;  %s1246_s0 = inlined_call_operand.hbm [shape: s8[128,128], index: 0, kind: input, shape index: {}]   ;;  %s1247_s1 = inlined_call_operand.vmem [shape: f32[128,1], index: 1, kind: input, shape index: {}]   ;;  %s1248_s2 = inlined_call_operand.hbm [shape: bf16[128,128], index: 2, kind: input, shape index: {}]   ;;  %s1249_s3 = inlined_call_operand.vmem [shape: bf16[256,128], index: 3, kind: input, shape index: {}]   ;;  %s1250_s4 = inlined_call_operand.vmem [shape: f32[1,128], index: 4, kind: input, shape index: {}]   ;;  %s1251_s5 = inlined_call_operand.hbm [shape: bf16[128,128], index: 5, kind: output, shape index: {}]  }
   0x1   :  { %11 = vsyncpa [#allocation6], 0 }
   0x2   :  { %12 = vsyncpa [#allocation4], 0  ;;  %s17_s20 = sshll.u32 %s1246_s0, 4  ;;  %s1076_s21 = smov [#allocation2]   ;;  %s18_s20 = int_to_ptr.hbm [resolvable:$true] %s17_s20 }
   0x3   :  { %s19_s22 = sshll.u32 %s1076_s21, 4  ;;  %s32_s25 = sshll.u32 %s1248_s2, 4  ;;  %s20_s22 = int_to_ptr.vmem [resolvable:$true] %s19_s22  ;;  %s33_s25 = int_to_ptr.hbm [resolvable:$true] %s32_s25 }
   0x4   :  { %s1077_s26 = smov 128   ;;  %s1078_s27 = smov 8  }
   0x5   :  { %25 = dma.hbm_to_vmem [thread:$0]  %s18_s20, 512, %s20_s22, [#allocation3], %s1077_s26, %s1077_s26, %s1078_s27  }
   0x6   :  { %s1079_s28 = smov [#allocation5]   ;;  %s1080_s30 = smov 64  }
   0x7   :  { %s34_s29 = sshll.u32 %s1079_s28, 4  ;;  %s1081_s6 = smov 4   ;;  %s35_s29 = int_to_ptr.vmem [resolvable:$true] %s34_s29 }
   0x8   :  { %40 = dma.hbm_to_vmem [thread:$0]  %s33_s25, 1024, %s35_s29, [#allocation6], %s1080_s30, %s1080_s30, %s1081_s6  }
   0x9   :  { %1070 = dma.done.wait [#allocation3], 512  }
   0xa   :  { %1071 = vsyncadd [#allocation3], 4294966784 }
   0xb   :  { %1072 = dma.done.wait [#allocation6], 1024  }
   0xc   :  { %1073 = vsyncadd [#allocation6], 4294966272  ;;  %v1082_v0 = vmov 0   ;;  %v890_v1 = vld [vmem:[#allocation5 + $0x38] sm:$0xff]  ;;  %v210_v2 = vld [vmem:[%s1247_s1] sm:$0xff]  ;;  %s739_s21 = sshll.u32 %s1251_s5, 4  ;;  %s740_s21 = int_to_ptr.hbm [resolvable:$true] %s739_s21 }
   0xd   :  { %994 = vset.pattern.permute.xlu0 %v1082_v0  ;;  %995 = vset.pattern.permute.xlu1 %v1082_v0  ;;  %v889_v3 = vld [vmem:[#allocation5 + $0x30] sm:$0xff]  ;;  %v888_v5 = vld [vmem:[#allocation5 + $0x28] sm:$0xff]  ;;  %v213_v7 = vld [vmem:[%s1247_s1 + $0x18] sm:$0xff] }
   0xe   :  { %996 = vset.pattern.permute.xlu2 %v1082_v0  ;;  %228 = vperm.xlu0 %994, %v210_v2   ;;  %v212_v4 = vld [vmem:[%s1247_s1 + $0x10] sm:$0xff]  ;;  %v211_v6 = vld [vmem:[%s1247_s1 + $0x8] sm:$0xff]  ;;  %v887_v8 = vld [vmem:[#allocation5 + $0x20] sm:$0xff] }
   0xf   :  { %161 = vmatpush.bf16.msra.mxu0 %v890_v1  ;;  %962 = vmatpush.bf16.msra.mxu3 %v890_v1  ;;  %v886_v9 = vld [vmem:[#allocation5 + $0x18] sm:$0xff]  ;;  %v214_v10 = vld [vmem:[%s1247_s1 + $0x20] sm:$0xff]  ;;  %v215_v11 = vld [vmem:[%s1247_s1 + $0x28] sm:$0xff] }
  0x10   :  { %238 = vperm.xlu1 %995, %v212_v4   ;;  %v222_v12 = vld [vmem:[%s1247_s1 + $0x60] sm:$0xff]  ;;  %v885_v13 = vld [vmem:[#allocation5 + $0x10] sm:$0xff]  ;;  %v56_v15 = vld [vmem:[#allocation2 + $0x18] sm:$0xff] }
  0x11   :  { %v53_v14 = vld [vmem:[#allocation2] sm:$0xff]  ;;  %288 = vperm.xlu2 %996, %v222_v12   ;;  %v69_v18 = vunpack.c.0.s8 %v56_v15  ;;  %v70_v19 = vunpack.c.1.s8 %v56_v15  ;;  %v884_v20 = vld [vmem:[#allocation5 + $0x8] sm:$0xff]  ;;  %v225_v21 = vld [vmem:[%s1247_s1 + $0x78] sm:$0xff]  ;;  %v71_v35 = vunpack.c.2.s8 %v56_v15  ;;  %v72_v36 = vunpack.c.3.s8 %v56_v15 }
  0x12   :  { %v57_v16 = vunpack.c.0.s8 %v53_v14  ;;  %v58_v17 = vunpack.c.1.s8 %v53_v14  ;;  %v216_v26 = vld [vmem:[%s1247_s1 + $0x30] sm:$0xff]  ;;  %v883_v27 = vld [vmem:[#allocation5] sm:$0xff]  ;;  %v219_v31 = vld [vmem:[%s1247_s1 + $0x48] sm:$0xff]  ;;  %v59_v33 = vunpack.c.2.s8 %v53_v14  ;;  %v60_v34 = vunpack.c.3.s8 %v53_v14 }
  0x13   :  { %162 = vmatpush.bf16.msra.mxu0 %v889_v3  ;;  %963 = vmatpush.bf16.msra.mxu3 %v889_v3  ;;  %v85_v24 = vcvt.s32.f32 %v69_v18  ;;  %v86_v25 = vcvt.s32.f32 %v70_v19  ;;  %v218_v30 = vld [vmem:[%s1247_s1 + $0x40] sm:$0xff]  ;;  %v223_v32 = vld [vmem:[%s1247_s1 + $0x68] sm:$0xff]  ;;  %v221_v37 = vld [vmem:[%s1247_s1 + $0x58] sm:$0xff]  ;;  %v87_v41 = vcvt.s32.f32 %v71_v35  ;;  %v88_v42 = vcvt.s32.f32 %v72_v36 }
  0x14   :  { %v73_v22 = vcvt.s32.f32 %v57_v16  ;;  %v74_v23 = vcvt.s32.f32 %v58_v17  ;;  %v224_v38 = vld [vmem:[%s1247_s1 + $0x70] sm:$0xff]  ;;  %v75_v39 = vcvt.s32.f32 %v59_v33  ;;  %v76_v40 = vcvt.s32.f32 %v60_v34  ;;  %v217_v45 = vld [vmem:[%s1247_s1 + $0x38] sm:$0xff]  ;;  %v54_v46 = vld [vmem:[#allocation2 + $0x8] sm:$0xff] }
  0x15   :  { %v95_v29 = vpack.c.bf16 %v86_v25, %v85_v24  ;;  %v96_v44 = vpack.c.bf16 %v88_v42, %v87_v41  ;;  %v61_v47 = vunpack.c.0.s8 %v54_v46  ;;  %v62_v48 = vunpack.c.1.s8 %v54_v46  ;;  %v220_v49 = vld [vmem:[%s1247_s1 + $0x50] sm:$0xff]  ;;  %v914_v63 = vld [vmem:[%s1249_s3 + $0x78] sm:$0xff]  ;;  %v912_v4 = vld [vmem:[%s1249_s3 + $0x68] sm:$0xff] }
  0x16   :  { %233 = vperm.xlu0 %994, %v211_v6   ;;  %v89_v28 = vpack.c.bf16 %v74_v23, %v73_v22  ;;  %v90_v43 = vpack.c.bf16 %v76_v40, %v75_v39  ;;  %v63_v53 = vunpack.c.2.s8 %v54_v46  ;;  %v64_v54 = vunpack.c.3.s8 %v54_v46  ;;  %v55_v58 = vld [vmem:[#allocation2 + $0x10] sm:$0xff]  ;;  %636 = vmatpush.bf16.msra.mxu2 %v914_v63  ;;  %v904_v12 = vld [vmem:[%s1249_s3 + $0x28] sm:$0xff]  ;;  %v903_v14 = vld [vmem:[%s1249_s3 + $0x20] sm:$0xff] }
  0x17   :  { %163 = vmatpush.bf16.msra.mxu0 %v888_v5  ;;  %964 = vmatpush.bf16.msra.mxu3 %v888_v5  ;;  %v77_v50 = vcvt.s32.f32 %v61_v47  ;;  %v78_v51 = vcvt.s32.f32 %v62_v48  ;;  %v65_v59 = vunpack.c.0.s8 %v55_v58  ;;  %v66_v60 = vunpack.c.1.s8 %v55_v58  ;;  %v913_v1 = vld [vmem:[%s1249_s3 + $0x70] sm:$0xff]  ;;  %v908_v15 = vld [vmem:[%s1249_s3 + $0x48] sm:$0xff]  ;;  %v902_v16 = vld [vmem:[%s1249_s3 + $0x18] sm:$0xff] }
  0x18   :  { %243 = vperm.xlu1 %995, %v213_v7   ;;  %v79_v55 = vcvt.s32.f32 %v63_v53  ;;  %v80_v56 = vcvt.s32.f32 %v64_v54  ;;  %v67_v2 = vunpack.c.2.s8 %v55_v58  ;;  %v68_v3 = vunpack.c.3.s8 %v55_v58  ;;  %v906_v7 = vld [vmem:[%s1249_s3 + $0x38] sm:$0xff]  ;;  %v907_v17 = vld [vmem:[%s1249_s3 + $0x40] sm:$0xff]  ;;  %v901_v19 = vld [vmem:[%s1249_s3 + $0x10] sm:$0xff] }
  0x19   :  { %293 = vperm.xlu2 %996, %v223_v32   ;;  %v91_v52 = vpack.c.bf16 %v78_v51, %v77_v50  ;;  %v81_v61 = vcvt.s32.f32 %v65_v59  ;;  %v82_v62 = vcvt.s32.f32 %v66_v60  ;;  %587 = vmatpush.bf16.msra.mxu1 %v906_v7  ;;  %v891_v18 = vld [vmem:[#allocation5] sm:$0xff]  ;;  %v892_v22 = vld [vmem:[#allocation5 + $0x8] sm:$0xff]  ;;  %v893_v25 = vld [vmem:[#allocation5 + $0x10] sm:$0xff] }
  0x1a   :  { %v92_v57 = vpack.c.bf16 %v80_v56, %v79_v55  ;;  %637 = vmatpush.bf16.msra.mxu2 %v913_v1  ;;  %v83_v5 = vcvt.s32.f32 %v67_v2  ;;  %v84_v6 = vcvt.s32.f32 %v68_v3  ;;  %v894_v47 = vld [vmem:[#allocation5 + $0x18] sm:$0xff] }
  0x1b   :  { %164 = vmatpush.bf16.msra.mxu0 %v887_v8  ;;  %965 = vmatpush.bf16.msra.mxu3 %v887_v8  ;;  %v93_v0 = vpack.c.bf16 %v82_v62, %v81_v61  ;;  %v911_v8 = vld [vmem:[%s1249_s3 + $0x60] sm:$0xff] }
  0x1e   :  { %248 = vperm.xlu0 %994, %v214_v10   ;;  %638 = vmatpush.bf16.msra.mxu2 %v912_v4  ;;  %v905_v10 = vld [vmem:[%s1249_s3 + $0x30] sm:$0xff] }
  0x1f   :  { %165 = vmatpush.bf16.msra.mxu0 %v886_v9  ;;  %966 = vmatpush.bf16.msra.mxu3 %v886_v9  ;;  %v94_v9 = vpack.c.bf16 %v84_v6, %v83_v5  ;;  %v895_v6 = vld [vmem:[#allocation5 + $0x20] sm:$0xff] }
  0x20   :  { %253 = vperm.xlu1 %995, %v215_v11   ;;  %v910_v11 = vld [vmem:[%s1249_s3 + $0x58] sm:$0xff]  ;;  %588 = vmatpush.bf16.msra.mxu1 %v905_v10 }
  0x21   :  { %298 = vperm.xlu2 %996, %v224_v38  }
  0x22   :  { %639 = vmatpush.bf16.msra.mxu2 %v911_v8 }
  0x23   :  { %166 = vmatpush.bf16.msra.mxu0 %v885_v13  ;;  %967 = vmatpush.bf16.msra.mxu3 %v885_v13  ;;  %v909_v13 = vld [vmem:[%s1249_s3 + $0x50] sm:$0xff] }
  0x24   :  { %589 = vmatpush.bf16.msra.mxu1 %v904_v12 }
  0x26   :  { %303 = vperm.xlu0 %994, %v225_v21   ;;  %640 = vmatpush.bf16.msra.mxu2 %v910_v11  ;;  %v899_v21 = vld [vmem:[%s1249_s3] sm:$0xff] }
  0x27   :  { %167 = vmatpush.bf16.msra.mxu0 %v884_v20  ;;  %968 = vmatpush.bf16.msra.mxu3 %v884_v20  ;;  %v900_v20 = vld [vmem:[%s1249_s3 + $0x8] sm:$0xff] }
  0x28   :  { %258 = vperm.xlu1 %995, %v216_v26   ;;  %590 = vmatpush.bf16.msra.mxu1 %v903_v14 }
  0x29   :  { %263 = vperm.xlu2 %996, %v217_v45  }
  0x2a   :  { %641 = vmatpush.bf16.msra.mxu2 %v909_v13 }
  0x2b   :  { %168 = vmatpush.bf16.msra.mxu0 %v883_v27  ;;  %969 = vmatpush.bf16.msra.mxu3 %v883_v27 }
  0x2c   :  { %591 = vmatpush.bf16.msra.mxu1 %v902_v16 }
  0x2e   :  { %169 = vmatmul.bf16.vlgmr.msra.gmra.mxu0 %v89_v28  ;;  %199 = vmatmul.bf16.vlgmr.msra.gmra.mxu3 %v95_v29 }
  0x2f   :  { %268 = vperm.xlu0 %994, %v218_v30   ;;  %970 = vmatpush.bf16.msrb.mxu3 %v906_v7 }
  0x30   :  { %273 = vperm.xlu1 %995, %v219_v31   ;;  %642 = vmatpush.bf16.msra.mxu2 %v908_v15 }
  0x31   :  { %278 = vperm.xlu2 %996, %v220_v49   ;;  %592 = vmatpush.bf16.msra.mxu1 %v901_v19 }
  0x33   :  { %971 = vmatpush.bf16.msrb.mxu3 %v905_v10 }
  0x34   :  { %643 = vmatpush.bf16.msra.mxu2 %v907_v17 }
  0x35   :  { %593 = vmatpush.bf16.msra.mxu1 %v900_v20 }
  0x37   :  { %283 = vperm.xlu0 %994, %v221_v37   ;;  %972 = vmatpush.bf16.msrb.mxu3 %v904_v12 }
  0x38   :  { %644 = vmatmul.bf16.vlgmr.msra.gmra.mxu2 %v891_v18  ;;  %v897_v18 = vld [vmem:[#allocation5 + $0x30] sm:$0xff] }
  0x39   :  { %594 = vmatpush.bf16.msra.mxu1 %v899_v21 }
  0x3b   :  { %973 = vmatpush.bf16.msrb.mxu3 %v903_v14 }
  0x3e   :  { %174 = vmatmul.bf16.gmra.mxu0 %v90_v43  ;;  %204 = vmatmul.bf16.gmra.mxu3 %v96_v44 }
  0x3f   :  { %974 = vmatpush.bf16.msrb.mxu3 %v902_v16 }
  0x43   :  { %975 = vmatpush.bf16.msrb.mxu3 %v901_v19  ;;  %v896_v19 = vld [vmem:[#allocation5 + $0x28] sm:$0xff] }
  0x47   :  { %976 = vmatpush.bf16.msrb.mxu3 %v900_v20 }
  0x48   :  { %649 = vmatmul.bf16.gmra.mxu2 %v892_v22 }
  0x4b   :  { %977 = vmatpush.bf16.msrb.mxu3 %v899_v21 }
  0x4e   :  { %179 = vmatmul.bf16.gmra.mxu0 %v91_v52 }
  0x4f   :  { %978 = vmatpush.bf16.msra.mxu3 %v914_v63 }
  0x53   :  { %979 = vmatpush.bf16.msra.mxu3 %v913_v1 }
  0x57   :  { %980 = vmatpush.bf16.msra.mxu3 %v912_v4 }
  0x58   :  { %654 = vmatmul.bf16.gmra.mxu2 %v893_v25 }
  0x5b   :  { %981 = vmatpush.bf16.msra.mxu3 %v911_v8 }
  0x5e   :  { %184 = vmatmul.bf16.gmra.mxu0 %v92_v57 }
  0x5f   :  { %982 = vmatpush.bf16.msra.mxu3 %v910_v11 }
  0x63   :  { %983 = vmatpush.bf16.msra.mxu3 %v909_v13 }
  0x67   :  { %984 = vmatpush.bf16.msra.mxu3 %v908_v15 }
  0x68   :  { %659 = vmatmul.bf16.gmra.mxu2 %v894_v47 }
  0x6b   :  { %v289_v26 = vpop.permute.xlu2 %288  ;;  %985 = vmatpush.bf16.msra.mxu3 %v907_v17 }
  0x6e   :  { %189 = vmatmul.bf16.gmra.mxu0 %v93_v0 }
  0x73   :  { %v294_v39 = vpop.permute.xlu2 %293 }
  0x78   :  { %664 = vmatmul.bf16.gmra.mxu2 %v895_v6 }
  0x7b   :  { %v299_v56 = vpop.permute.xlu2 %298 }
  0x7e   :  { %194 = vmatmul.bf16.gmra.mxu0 %v94_v9 }
  0x80   :  { %v229_v23 = vpop.permute.xlu0 %228 }
  0x82   :  { %v239_v35 = vpop.permute.xlu1 %238 }
  0x83   :  { %v264_v22 = vpop.permute.xlu2 %263 }
  0x88   :  { %v234_v29 = vpop.permute.xlu0 %233  ;;  %669 = vmatmul.bf16.gmra.mxu2 %v896_v19 }
  0x8a   :  { %v244_v52 = vpop.permute.xlu1 %243 }
  0x90   :  { %v249_v48 = vpop.permute.xlu0 %248 }
  0x92   :  { %v254_v9 = vpop.permute.xlu1 %253 }
  0x98   :  { %v304_v61 = vpop.permute.xlu0 %303 }
  0x9a   :  { %v259_v20 = vpop.permute.xlu1 %258 }
  0xab   :  { %v170_v24 = vpop.f32.mrf.mxu0 }
  0xac   :  { %v306_v27 = vmul.f32 %v229_v23, %v170_v24 }
  0xae   :  { %v343_v31 = vpack.c.bf16 %v306_v27, %v306_v27 }
  0xb0   :  { %v375_v36 = vunpack.c.l.b16 %v343_v31  ;;  %v898_v31 = vld [vmem:[#allocation5 + $0x38] sm:$0xff] }
  0xb1   :  { %v200_v28 = vpop.f32.mrf.mxu3 }
  0xb2   :  { %v318_v32 = vmul.f32 %v289_v26, %v200_v28 }
  0xb3   :  { %v172_v30 = vpop.f32.mrf.mxu0 }
  0xb4   :  { %v307_v33 = vmul.f32 %v234_v29, %v172_v30  ;;  %v355_v37 = vpack.c.bf16 %v318_v32, %v318_v32  ;;  %v269_v32 = vpop.permute.xlu0 %268 }
  0xb6   :  { %v344_v34 = vpack.c.bf16 %v307_v33, %v307_v33  ;;  %v387_v44 = vunpack.c.l.b16 %v355_v37 }
  0xb8   :  { %v376_v38 = vunpack.c.l.b16 %v344_v34  ;;  %v274_v34 = vpop.permute.xlu1 %273 }
  0xb9   :  { %v202_v40 = vpop.f32.mrf.mxu3 }
  0xba   :  { %v319_v41 = vmul.f32 %v294_v39, %v202_v40  ;;  %v391_v42 = vpack.c.b16 %v376_v38, %v375_v36 }
  0xbb   :  { %v175_v43 = vpop.f32.mrf.mxu0 }
  0xbc   :  { %v356_v45 = vpack.c.bf16 %v319_v41, %v319_v41  ;;  %595 = vmatmul.bf16.vlgmr.msra.gmra.mxu1 %v391_v42  ;;  %v308_v50 = vmul.f32 %v239_v35, %v175_v43  ;;  %v279_v43 = vpop.permute.xlu2 %278 }
  0xbe   :  { %v388_v46 = vunpack.c.l.b16 %v356_v45  ;;  %v345_v54 = vpack.c.bf16 %v308_v50, %v308_v50  ;;  %v284_v45 = vpop.permute.xlu0 %283 }
  0xc0   :  { %v397_v49 = vpack.c.b16 %v388_v46, %v387_v44  ;;  %v377_v59 = vunpack.c.l.b16 %v345_v54 }
  0xc1   :  { %v205_v51 = vpop.f32.mrf.mxu3 }
  0xc2   :  { %625 = vmatmul.bf16.vlgmr.msrb.gmra.mxu3 %v397_v49  ;;  %v320_v57 = vmul.f32 %v299_v56, %v205_v51 }
  0xc3   :  { %v177_v53 = vpop.f32.mrf.mxu0 }
  0xc4   :  { %v309_v55 = vmul.f32 %v244_v52, %v177_v53  ;;  %v357_v63 = vpack.c.bf16 %v320_v57, %v320_v57  ;;  %v645_v53 = vpop.f32.mrf.mxu2  ;;  %v1222_v57 = vld [vmem:[%s1250_s4] ss:$0 sm:$0xff]  ;;  %s1083_s4 = smov [#allocation7]  }
  0xc5   :  { %s737_s18 = sshll.u32 %s1083_s4, 4  ;;  %s738_s18 = int_to_ptr.vmem [resolvable:$true] %s737_s18 }
  0xc6   :  { %v346_v58 = vpack.c.bf16 %v309_v55, %v309_v55  ;;  %v389_v4 = vunpack.c.l.b16 %v357_v63 }
  0xc8   :  { %v378_v60 = vunpack.c.l.b16 %v346_v58 }
  0xc9   :  { %v207_v62 = vpop.f32.mrf.mxu3 }
  0xca   :  { %v321_v0 = vmul.f32 %v304_v61, %v207_v62  ;;  %v392_v1 = vpack.c.b16 %v378_v60, %v377_v59 }
  0xcb   :  { %v180_v2 = vpop.f32.mrf.mxu0 }
  0xcc   :  { %v358_v3 = vpack.c.bf16 %v321_v0, %v321_v0  ;;  %600 = vmatmul.bf16.gmra.mxu1 %v392_v1  ;;  %v310_v7 = vmul.f32 %v249_v48, %v180_v2  ;;  %v647_v54 = vpop.f32.mrf.mxu2 }
  0xce   :  { %v390_v5 = vunpack.c.l.b16 %v358_v3  ;;  %v347_v11 = vpack.c.bf16 %v310_v7, %v310_v7 }
  0xd0   :  { %v398_v8 = vpack.c.b16 %v390_v5, %v389_v4  ;;  %v379_v14 = vunpack.c.l.b16 %v347_v11 }
  0xd2   :  { %630 = vmatmul.bf16.gmra.mxu3 %v398_v8 }
  0xd3   :  { %v182_v10 = vpop.f32.mrf.mxu0 }
  0xd4   :  { %v311_v12 = vmul.f32 %v254_v9, %v182_v10  ;;  %v650_v56 = vpop.f32.mrf.mxu2 }
  0xd6   :  { %v348_v13 = vpack.c.bf16 %v311_v12, %v311_v12 }
  0xd8   :  { %v380_v15 = vunpack.c.l.b16 %v348_v13 }
  0xda   :  { %v393_v16 = vpack.c.b16 %v380_v15, %v379_v14 }
  0xdb   :  { %v185_v17 = vpop.f32.mrf.mxu0 }
  0xdc   :  { %605 = vmatmul.bf16.gmra.mxu1 %v393_v16  ;;  %v312_v21 = vmul.f32 %v259_v20, %v185_v17  ;;  %v652_v62 = vpop.f32.mrf.mxu2 }
  0xde   :  { %v349_v24 = vpack.c.bf16 %v312_v21, %v312_v21 }
  0xe0   :  { %v381_v27 = vunpack.c.l.b16 %v349_v24 }
  0xe2   :  { %674 = vmatmul.bf16.vlgmr.msra.gmra.mxu3 %v897_v18 }
  0xe3   :  { %v187_v23 = vpop.f32.mrf.mxu0 }
  0xe4   :  { %v313_v25 = vmul.f32 %v264_v22, %v187_v23  ;;  %v655_v6 = vpop.f32.mrf.mxu2 }
  0xe6   :  { %v350_v26 = vpack.c.bf16 %v313_v25, %v313_v25 }
  0xe8   :  { %v382_v28 = vunpack.c.l.b16 %v350_v26 }
  0xea   :  { %v394_v29 = vpack.c.b16 %v382_v28, %v381_v27 }
  0xeb   :  { %v190_v30 = vpop.f32.mrf.mxu0 }
  0xec   :  { %610 = vmatmul.bf16.gmra.mxu1 %v394_v29  ;;  %v314_v33 = vmul.f32 %v269_v32, %v190_v30  ;;  %v657_v15 = vpop.f32.mrf.mxu2 }
  0xee   :  { %v351_v36 = vpack.c.bf16 %v314_v33, %v314_v33 }
  0xf0   :  { %v383_v39 = vunpack.c.l.b16 %v351_v36 }
  0xf2   :  { %679 = vmatmul.bf16.gmra.mxu3 %v898_v31 }
  0xf3   :  { %v192_v35 = vpop.f32.mrf.mxu0 }
  0xf4   :  { %v315_v37 = vmul.f32 %v274_v34, %v192_v35  ;;  %v660_v21 = vpop.f32.mrf.mxu2 }
  0xf6   :  { %v352_v38 = vpack.c.bf16 %v315_v37, %v315_v37 }
  0xf8   :  { %v384_v40 = vunpack.c.l.b16 %v352_v38 }
  0xfa   :  { %v395_v41 = vpack.c.b16 %v384_v40, %v383_v39 }
  0xfb   :  { %v195_v42 = vpop.f32.mrf.mxu0 }
  0xfc   :  { %615 = vmatmul.bf16.gmra.mxu1 %v395_v41  ;;  %v316_v44 = vmul.f32 %v279_v43, %v195_v42  ;;  %v662_v31 = vpop.f32.mrf.mxu2 }
  0xfe   :  { %v353_v47 = vpack.c.bf16 %v316_v44, %v316_v44 }
 0x100   :  { %v385_v50 = vunpack.c.l.b16 %v353_v47 }
 0x103   :  { %v197_v46 = vpop.f32.mrf.mxu0 }
 0x104   :  { %v317_v48 = vmul.f32 %v284_v45, %v197_v46  ;;  %v665_v44 = vpop.f32.mrf.mxu2 }
 0x106   :  { %v354_v49 = vpack.c.bf16 %v317_v48, %v317_v48 }
 0x108   :  { %v386_v51 = vunpack.c.l.b16 %v354_v49 }
 0x10a   :  { %v396_v52 = vpack.c.b16 %v386_v51, %v385_v50 }
 0x10c   :  { %620 = vmatmul.bf16.gmra.mxu1 %v396_v52 }
 0x139   :  { %v596_v55 = vpop.f32.mrf.mxu1 }
 0x13a   :  { %v597_v58 = vadd.f32 %v1222_v57, %v596_v55 }
 0x13c   :  { %v646_v60 = vadd.f32 %v645_v53, %v597_v58 }
 0x13e   :  { %v685_v1 = vmax.f32 %v646_v60, 0.0 }
 0x141   :  { %v598_v59 = vpop.f32.mrf.mxu1 }
 0x142   :  { %v599_v61 = vadd.f32 %v1222_v57, %v598_v59 }
 0x144   :  { %v648_v63 = vadd.f32 %v647_v54, %v599_v61 }
 0x145   :  { %v626_v0 = vpop.f32.mrf.mxu3 }
 0x146   :  { %v686_v2 = vmax.f32 %v648_v63, 0.0  ;;  %v627_v30 = vadd.f32 %v1222_v57, %v626_v0 }
 0x148   :  { %v918_v3 = vpack.c.bf16 %v686_v2, %v685_v1 }
 0x149   :  { %v601_v4 = vpop.f32.mrf.mxu1 }
 0x14a   :  { %919 = vst [vmem:[#allocation7] sm:$0xff] %v918_v3   ;;  %v602_v7 = vadd.f32 %v1222_v57, %v601_v4 }
 0x14c   :  { %v651_v9 = vadd.f32 %v650_v56, %v602_v7  ;;  %v667_v56 = vpop.f32.mrf.mxu2 }
 0x14d   :  { %v628_v5 = vpop.f32.mrf.mxu3 }
 0x14e   :  { %v687_v13 = vmax.f32 %v651_v9, 0.0  ;;  %v629_v32 = vadd.f32 %v1222_v57, %v628_v5 }
 0x151   :  { %v603_v8 = vpop.f32.mrf.mxu1 }
 0x152   :  { %v604_v10 = vadd.f32 %v1222_v57, %v603_v8 }
 0x154   :  { %v653_v11 = vadd.f32 %v652_v62, %v604_v10  ;;  %v670_v4 = vpop.f32.mrf.mxu2 }
 0x155   :  { %v631_v12 = vpop.f32.mrf.mxu3 }
 0x156   :  { %v688_v14 = vmax.f32 %v653_v11, 0.0  ;;  %v632_v50 = vadd.f32 %v1222_v57, %v631_v12 }
 0x158   :  { %v923_v16 = vpack.c.bf16 %v688_v14, %v687_v13 }
 0x159   :  { %v606_v17 = vpop.f32.mrf.mxu1 }
 0x15a   :  { %955 = vst [vmem:[#allocation7 + $0x8] sm:$0xff] %v923_v16   ;;  %v607_v19 = vadd.f32 %v1222_v57, %v606_v17 }
 0x15c   :  { %v656_v22 = vadd.f32 %v655_v6, %v607_v19  ;;  %v672_v10 = vpop.f32.mrf.mxu2 }
 0x15d   :  { %v633_v18 = vpop.f32.mrf.mxu3 }
 0x15e   :  { %v689_v26 = vmax.f32 %v656_v22, 0.0  ;;  %v634_v51 = vadd.f32 %v1222_v57, %v633_v18 }
 0x161   :  { %v608_v20 = vpop.f32.mrf.mxu1 }
 0x162   :  { %v609_v23 = vadd.f32 %v1222_v57, %v608_v20 }
 0x164   :  { %v658_v24 = vadd.f32 %v657_v15, %v609_v23 }
 0x165   :  { %v675_v25 = vpop.f32.mrf.mxu3 }
 0x166   :  { %v690_v27 = vmax.f32 %v658_v24, 0.0  ;;  %v676_v33 = vadd.f32 %v675_v25, %v627_v30 }
 0x168   :  { %v928_v28 = vpack.c.bf16 %v690_v27, %v689_v26  ;;  %v697_v37 = vmax.f32 %v676_v33, 0.0 }
 0x169   :  { %v611_v29 = vpop.f32.mrf.mxu1 }
 0x16a   :  { %956 = vst [vmem:[#allocation7 + $0x10] sm:$0xff] %v928_v28   ;;  %v612_v35 = vadd.f32 %v1222_v57, %v611_v29 }
 0x16c   :  { %v661_v40 = vadd.f32 %v660_v21, %v612_v35 }
 0x16d   :  { %v677_v34 = vpop.f32.mrf.mxu3 }
 0x16e   :  { %v678_v36 = vadd.f32 %v677_v34, %v629_v32  ;;  %v691_v46 = vmax.f32 %v661_v40, 0.0 }
 0x170   :  { %v698_v38 = vmax.f32 %v678_v36, 0.0 }
 0x171   :  { %v613_v39 = vpop.f32.mrf.mxu1 }
 0x172   :  { %v948_v41 = vpack.c.bf16 %v698_v38, %v697_v37  ;;  %v614_v42 = vadd.f32 %v1222_v57, %v613_v39 }
 0x174   :  { %960 = vst [vmem:[#allocation7 + $0x30] sm:$0xff] %v948_v41   ;;  %v663_v43 = vadd.f32 %v662_v31, %v614_v42 }
 0x175   :  { %v680_v45 = vpop.f32.mrf.mxu3 }
 0x176   :  { %v692_v47 = vmax.f32 %v663_v43, 0.0  ;;  %v681_v52 = vadd.f32 %v680_v45, %v632_v50 }
 0x178   :  { %v933_v48 = vpack.c.bf16 %v692_v47, %v691_v46  ;;  %v699_v58 = vmax.f32 %v681_v52, 0.0 }
 0x179   :  { %v616_v49 = vpop.f32.mrf.mxu1 }
 0x17a   :  { %957 = vst [vmem:[#allocation7 + $0x18] sm:$0xff] %v933_v48   ;;  %v617_v54 = vadd.f32 %v1222_v57, %v616_v49 }
 0x17c   :  { %v666_v61 = vadd.f32 %v665_v44, %v617_v54 }
 0x17d   :  { %v682_v53 = vpop.f32.mrf.mxu3 }
 0x17e   :  { %v683_v55 = vadd.f32 %v682_v53, %v634_v51  ;;  %v693_v1 = vmax.f32 %v666_v61, 0.0 }
 0x180   :  { %v700_v59 = vmax.f32 %v683_v55, 0.0 }
 0x181   :  { %v618_v60 = vpop.f32.mrf.mxu1 }
 0x182   :  { %v953_v62 = vpack.c.bf16 %v700_v59, %v699_v58  ;;  %v619_v63 = vadd.f32 %v1222_v57, %v618_v60 }
 0x184   :  { %961 = vst [vmem:[#allocation7 + $0x38] sm:$0xff] %v953_v62   ;;  %v668_v0 = vadd.f32 %v667_v56, %v619_v63 }
 0x186   :  { %v694_v2 = vmax.f32 %v668_v0, 0.0 }
 0x188   :  { %v938_v3 = vpack.c.bf16 %v694_v2, %v693_v1 }
 0x189   :  { %v621_v5 = vpop.f32.mrf.mxu1 }
 0x18a   :  { %958 = vst [vmem:[#allocation7 + $0x20] sm:$0xff] %v938_v3   ;;  %v622_v6 = vadd.f32 %v1222_v57, %v621_v5 }
 0x18c   :  { %v671_v8 = vadd.f32 %v670_v4, %v622_v6 }
 0x18e   :  { %v695_v12 = vmax.f32 %v671_v8, 0.0 }
 0x191   :  { %v623_v7 = vpop.f32.mrf.mxu1 }
 0x192   :  { %v624_v9 = vadd.f32 %v1222_v57, %v623_v7 }
 0x194   :  { %v673_v11 = vadd.f32 %v672_v10, %v624_v9 }
 0x196   :  { %v696_v13 = vmax.f32 %v673_v11, 0.0 }
 0x198   :  { %v943_v14 = vpack.c.bf16 %v696_v13, %v695_v12 }
 0x19a   :  { %959 = vst [vmem:[#allocation7 + $0x28] sm:$0xff] %v943_v14  }
 0x19b   :  { %745 = dma.vmem_to_hbm [thread:$0]  %s738_s18, 1024, %s740_s21, [#allocation4], %s1080_s30, %s1080_s30, %s1081_s6  }
 0x19c   :  { %1074 = dma.done.wait [#allocation4], 1024  }
 0x19d   :  { %1075 = vsyncadd [#allocation4], 4294966272 }
 0x19e   :  { %750 = vsyncpa [#allocation3], 1 }
 0x19f   :  { %751 = vsyncpa [#allocation6], 1 }
 0x1a0   :  { %752 = vsyncpa [#allocation4], 1 }

</bundles_post_ra>
